<compile_context>
chip_gen: v7x
topology: tpu7x:2x2x1
jax: 0.10.0
libtpu: 0.0.40
codegen_flags: <defaults>
</compile_context>

<pallas_src>
import jax
import jax.numpy as jnp
import numpy as np
from jax.experimental import pallas as pl
from jax.experimental.pallas import tpu as pltpu

NUM_FEATURES = 2      # dataset.num_features (constant-1 feature + degree, adddegree=True)
HIDDEN = 64           # GIN MLP width
FC1 = 32              # head fc1 width
NUM_LAYERS = 5


# ---------------------------------------------------------------------------
# Fused kernel: grid axis = layer index.
#   per layer:  h = (1 + eps_l) * x + A @ x           (GINConv, sum aggregation)
#               h = relu(h @ W1_l + b1_l) @ W2_l + b2_l
#               x = relu(h)                           (outer F.relu in forward)
#   epilogue (last layer): pooled = pool @ x ; out = relu(pooled@fw1+fb1)@fw2+fb2
# ---------------------------------------------------------------------------
def _gin_kernel(eps_ref,                                   # SMEM (L,)
                x_ref, a_ref,                              # VMEM (N,H), (N,N)
                w1_ref, b1_ref, w2_ref, b2_ref,            # per-layer weight blocks
                pool_ref, fw1_ref, fb1_ref, fw2_ref, fb2_ref,  # head params
                o_ref,                                     # (B, 1) output
                act_ref):                                  # VMEM scratch (N, H)
    l = pl.program_id(0)

    @pl.when(l == 0)
    def _init():
        act_ref[...] = x_ref[...]          # padded input features (zeros in cols F..H)

    x = act_ref[...]
    eps = eps_ref[l]

    agg = (1.0 + eps) * x + jnp.dot(a_ref[...], x, preferred_element_type=jnp.float32)
    h = jnp.dot(agg, w1_ref[0], preferred_element_type=jnp.float32) + b1_ref[0]
    h = jnp.maximum(h, 0.0)
    h = jnp.dot(h, w2_ref[0], preferred_element_type=jnp.float32) + b2_ref[0]
    new_act = jnp.maximum(h, 0.0)
    act_ref[...] = new_act

    @pl.when(l == NUM_LAYERS - 1)
    def _head():
        pooled = jnp.dot(pool_ref[...], new_act, preferred_element_type=jnp.float32)
        hh = jnp.dot(pooled, fw1_ref[...], preferred_element_type=jnp.float32) + fb1_ref[...]
        hh = jnp.maximum(hh, 0.0)
        o_ref[...] = jnp.dot(hh, fw2_ref[...], preferred_element_type=jnp.float32) + fb2_ref[...]


def gin_forward(x, a, pool, params):
    n = x.shape[0]
    b = pool.shape[0]

    # Pad input features to HIDDEN so layer 1 uses the same [H, H] weight shape
    # (padded weight rows are zero -> identical math).
    x_pad = jnp.zeros((n, HIDDEN), jnp.float32).at[:, : x.shape[1]].set(x)

    args = (params["eps"], x_pad, a,
            params["w1s"], params["b1s"], params["w2s"], params["b2s"],
            pool, params["fw1"], params["fb1"], params["fw2"], params["fb2"])

    in_specs = [
        pl.BlockSpec(memory_space=pltpu.MemorySpace.SMEM),              # eps
        pl.BlockSpec((n, HIDDEN), lambda l: (0, 0)),                    # x (fetched once)
        pl.BlockSpec((n, n), lambda l: (0, 0)),                         # A (fetched once)
        pl.BlockSpec((1, HIDDEN, HIDDEN), lambda l: (l, 0, 0)),         # W1[l]
        pl.BlockSpec((1, 1, HIDDEN), lambda l: (l, 0, 0)),              # b1[l]
        pl.BlockSpec((1, HIDDEN, HIDDEN), lambda l: (l, 0, 0)),         # W2[l]
        pl.BlockSpec((1, 1, HIDDEN), lambda l: (l, 0, 0)),              # b2[l]
        pl.BlockSpec((b, n), lambda l: (0, 0)),                         # pool
        pl.BlockSpec((HIDDEN, FC1), lambda l: (0, 0)),                  # fc1 W
        pl.BlockSpec((1, FC1), lambda l: (0, 0)),                       # fc1 b
        pl.BlockSpec((FC1, 1), lambda l: (0, 0)),                       # fc2 W
        pl.BlockSpec((1, 1), lambda l: (0, 0)),                         # fc2 b
    ]

    return pl.pallas_call(
        _gin_kernel,
        out_shape=jax.ShapeDtypeStruct((b, 1), jnp.float32),
        grid=(NUM_LAYERS,),
        in_specs=in_specs,
        out_specs=pl.BlockSpec((b, 1), lambda l: (0, 0)),
        scratch_shapes=[pltpu.VMEM((n, HIDDEN), jnp.float32)],
        compiler_params=pltpu.CompilerParams(
            dimension_semantics=("arbitrary",),           # layer axis carries activation
            vmem_limit_bytes=48 * 1024 * 1024,            # fits v7x 64 MiB physical VMEM
        ),
    )(*args)


# ---------------------------------------------------------------------------
# Parameter init (deterministic, PyTorch-Linear-style uniform bounds).
# GINConv(train_eps=True) initializes eps = 0.
# ---------------------------------------------------------------------------
def _init_linear(key, fan_in, fan_out):
    k1, k2 = jax.random.split(key)
    bound = 1.0 / np.sqrt(fan_in)
    w = jax.random.uniform(k1, (fan_in, fan_out), minval=-bound, maxval=bound, dtype=jnp.float32)
    b = jax.random.uniform(k2, (fan_out,), minval=-bound, maxval=bound, dtype=jnp.float32)
    return w, b


def init_params(key):
    w1s, b1s, w2s, b2s = [], [], [], []
    for i in range(NUM_LAYERS):
        fan_in = NUM_FEATURES if i == 0 else HIDDEN
        keys = jax.random.split(jax.random.fold_in(key, i), 2)
        w1, b1 = _init_linear(keys[0], fan_in, HIDDEN)
        w2, b2 = _init_linear(keys[1], HIDDEN, HIDDEN)
        # zero-pad layer-1's input dim so every layer shares a [HIDDEN, HIDDEN] weight
        w1p = jnp.zeros((HIDDEN, HIDDEN), jnp.float32).at[:fan_in, :].set(w1)
        w1s.append(w1p)
        b1s.append(b1[None, :])
        w2s.append(w2)
        b2s.append(b2[None, :])
    hkeys = jax.random.split(jax.random.fold_in(key, 100), 2)
    fw1, fb1 = _init_linear(hkeys[0], HIDDEN, FC1)
    fw2, fb2 = _init_linear(hkeys[1], FC1, 1)
    return dict(
        eps=jnp.zeros((NUM_LAYERS,), jnp.float32),
        w1s=jnp.stack(w1s), b1s=jnp.stack(b1s),
        w2s=jnp.stack(w2s), b2s=jnp.stack(b2s),
        fw1=fw1, fb1=fb1[None, :], fw2=fw2, fb2=fb2[None, :],
    )


# Pure-JAX reference of the GinNet forward (uses the UNPADDED layer-1 weight to
# prove the zero-padding is semantics-preserving).
def _reference(x, a, pool, params):
    h = x
    for i in range(NUM_LAYERS):
        eps = params["eps"][i]
        agg = (1.0 + eps) * h + a @ h
        nin = h.shape[1]
        w1 = params["w1s"][i][:nin]
        t = jax.nn.relu(agg @ w1 + params["b1s"][i, 0])
        t = t @ params["w2s"][i] + params["b2s"][i, 0]
        h = jax.nn.relu(t)
    pooled = pool @ h
    hh = jax.nn.relu(pooled @ params["fw1"] + params["fb1"])
    return hh @ params["fw2"] + params["fb2"]


if __name__ == "__main__":
    key = jax.random.PRNGKey(0)

    # Two ring graphs of 8 nodes each (batch of 2 graphs, N = 16 nodes, E = 32 directed edges).
    nodes_per_graph, num_graphs = 8, 2
    N = nodes_per_graph * num_graphs
    src_list, dst_list = [], []
    for g in range(num_graphs):
        for i in range(nodes_per_graph):
            u = g * nodes_per_graph + i
            v = g * nodes_per_graph + (i + 1) % nodes_per_graph
            src_list += [u, v]
            dst_list += [v, u]
    src = jnp.asarray(src_list, dtype=jnp.int32)
    dst = jnp.asarray(dst_list, dtype=jnp.int32)

    # Dense adjacency for sum aggregation: A[i, j] = 1 if edge j -> i, so (A @ x)[i] = sum_{j in N(i)} x_j
    A = jnp.zeros((N, N), dtype=jnp.float32).at[dst, src].add(1.0)

    # Node features: [constant 1, degree]  (SpectralDesign adddegree=True) -> num_features = 2
    degree = jnp.sum(A, axis=1, keepdims=True)
    x = jnp.concatenate([jnp.ones((N, 1), dtype=jnp.float32), degree], axis=1)

    # Batch assignment / pooling matrix for global_add_pool
    batch = jnp.repeat(jnp.arange(num_graphs, dtype=jnp.int32), nodes_per_graph)
    pool = (batch[None, :] == jnp.arange(num_graphs, dtype=jnp.int32)[:, None]).astype(jnp.float32)

    params = init_params(key)

    out = jax.block_until_ready(gin_forward(x, A, pool, params))
    ref = _reference(x, A, pool, params)

    np.testing.assert_allclose(np.asarray(out), np.asarray(ref), rtol=1e-4, atol=1e-4)
    assert out.shape == (num_graphs, 1)

    print("KERNEL_OK")
</pallas_src>

<mosaic_0001>
module attributes {stable_mosaic.version = 11 : i64} {
  func.func @_gin_kernel(%arg0: i32, %arg1: memref<5xf32, #tpu.memory_space<smem>>, %arg2: memref<16x64xf32, #tpu.memory_space<vmem>>, %arg3: memref<16x16xf32, #tpu.memory_space<vmem>>, %arg4: memref<1x64x64xf32, #tpu.memory_space<vmem>>, %arg5: memref<1x1x64xf32, #tpu.memory_space<vmem>>, %arg6: memref<1x64x64xf32, #tpu.memory_space<vmem>>, %arg7: memref<1x1x64xf32, #tpu.memory_space<vmem>>, %arg8: memref<2x16xf32, #tpu.memory_space<vmem>>, %arg9: memref<64x32xf32, #tpu.memory_space<vmem>>, %arg10: memref<1x32xf32, #tpu.memory_space<vmem>>, %arg11: memref<32x1xf32, #tpu.memory_space<vmem>>, %arg12: memref<1x1xf32, #tpu.memory_space<vmem>>, %arg13: memref<2x1xf32, #tpu.memory_space<vmem>>, %arg14: memref<16x64xf32, #tpu.memory_space<vmem>>) attributes {dimension_semantics = [#tpu.dimension_semantics<arbitrary>], iteration_bounds = array<i64: 5>, scalar_prefetch = 0 : i64, scratch_operands = 1 : i64, tpu.core_type = #tpu.core_type<tc>, window_params = [{transform_indices = @transform_0, window_bounds = array<i64: 5>}, {pipeline_mode = #tpu.pipeline_mode<synchronous>, transform_indices = @transform_1, window_bounds = array<i64: 16, 64>}, {pipeline_mode = #tpu.pipeline_mode<synchronous>, transform_indices = @transform_2, window_bounds = array<i64: 16, 16>}, {transform_indices = @transform_3, window_bounds = array<i64: 1, 64, 64>}, {transform_indices = @transform_4, window_bounds = array<i64: 1, 1, 64>}, {transform_indices = @transform_5, window_bounds = array<i64: 1, 64, 64>}, {transform_indices = @transform_6, window_bounds = array<i64: 1, 1, 64>}, {pipeline_mode = #tpu.pipeline_mode<synchronous>, transform_indices = @transform_7, window_bounds = array<i64: 2, 16>}, {pipeline_mode = #tpu.pipeline_mode<synchronous>, transform_indices = @transform_8, window_bounds = array<i64: 64, 32>}, {pipeline_mode = #tpu.pipeline_mode<synchronous>, transform_indices = @transform_9, window_bounds = array<i64: 1, 32>}, {pipeline_mode = #tpu.pipeline_mode<synchronous>, transform_indices = @transform_10, window_bounds = array<i64: 32, 1>}, {pipeline_mode = #tpu.pipeline_mode<synchronous>, transform_indices = @transform_11, window_bounds = array<i64: 1, 1>}, {pipeline_mode = #tpu.pipeline_mode<synchronous>, transform_indices = @transform_12, window_bounds = array<i64: 2, 1>}]} {
    %c0_i32 = arith.constant 0 : i32
    %0 = arith.cmpi eq, %arg0, %c0_i32 : i32
    %1 = arith.extui %0 : i1 to i32
    %c0_i32_0 = arith.constant 0 : i32
    %2 = arith.cmpi ne, %1, %c0_i32_0 : i32
    scf.if %2 {
      %c0_24 = arith.constant 0 : index
      %c0_25 = arith.constant 0 : index
      %34 = vector.load %arg2[%c0_24, %c0_25] : memref<16x64xf32, #tpu.memory_space<vmem>>, vector<16x64xf32>
      %c0_26 = arith.constant 0 : index
      %c0_27 = arith.constant 0 : index
      %35 = vector.load %arg14[%c0_26, %c0_27] : memref<16x64xf32, #tpu.memory_space<vmem>>, vector<16x64xf32>
      tpu.vector_store %arg14[%c0_26, %c0_27], %34 {strides = array<i32>} : memref<16x64xf32, #tpu.memory_space<vmem>>, vector<16x64xf32>,
    } else {
    }
    %c0 = arith.constant 0 : index
    %c0_1 = arith.constant 0 : index
    %3 = vector.load %arg14[%c0, %c0_1] : memref<16x64xf32, #tpu.memory_space<vmem>>, vector<16x64xf32>
    %4 = arith.index_cast %arg0 : i32 to index
    %5 = memref.load %arg1[%4] : memref<5xf32, #tpu.memory_space<smem>>
    %cst = arith.constant 1.000000e+00 : f32
    %6 = arith.addf %cst, %5 : f32
    %7 = vector.broadcast %6 : f32 to vector<16x64xf32>
    %8 = arith.mulf %7, %3 : vector<16x64xf32>
    %c0_2 = arith.constant 0 : index
    %c0_3 = arith.constant 0 : index
    %9 = vector.load %arg3[%c0_2, %c0_3] : memref<16x16xf32, #tpu.memory_space<vmem>>, vector<16x16xf32>
    %cst_4 = arith.constant dense<0.000000e+00> : vector<16x64xf32>
    %10 = tpu.matmul %9, %3, %cst_4 {dimension_numbers = #tpu.dot_dimension_numbers<[1], [0], [0], [1], [0, 0, 1, 1], [], []>} : vector<16x16xf32>, vector<16x64xf32>, vector<16x64xf32> -> vector<16x64xf32>
    %11 = arith.addf %8, %10 : vector<16x64xf32>
    %c0_5 = arith.constant 0 : index
    %c0_6 = arith.constant 0 : index
    %c0_7 = arith.constant 0 : index
    %12 = vector.load %arg4[%c0_5, %c0_6, %c0_7] : memref<1x64x64xf32, #tpu.memory_space<vmem>>, vector<1x64x64xf32>
    %13 = vector.shape_cast %12 : vector<1x64x64xf32> to vector<64x64xf32>
    %cst_8 = arith.constant dense<0.000000e+00> : vector<16x64xf32>
    %14 = tpu.matmul %11, %13, %cst_8 {dimension_numbers = #tpu.dot_dimension_numbers<[1], [0], [0], [1], [0, 0, 1, 1], [], []>} : vector<16x64xf32>, vector<64x64xf32>, vector<16x64xf32> -> vector<16x64xf32>
    %c0_9 = arith.constant 0 : index
    %c0_10 = arith.constant 0 : index
    %c0_11 = arith.constant 0 : index
    %15 = vector.load %arg5[%c0_9, %c0_10, %c0_11] : memref<1x1x64xf32, #tpu.memory_space<vmem>>, vector<1x1x64xf32>
    %16 = vector.shape_cast %15 : vector<1x1x64xf32> to vector<1x64xf32>
    %17 = vector.broadcast %16 : vector<1x64xf32> to vector<16x64xf32>
    %18 = arith.addf %14, %17 : vector<16x64xf32>
    %cst_12 = arith.constant 0.000000e+00 : f32
    %19 = vector.broadcast %cst_12 : f32 to vector<16x64xf32>
    %20 = arith.maximumf %18, %19 : vector<16x64xf32>
    %c0_13 = arith.constant 0 : index
    %c0_14 = arith.constant 0 : index
    %c0_15 = arith.constant 0 : index
    %21 = vector.load %arg6[%c0_13, %c0_14, %c0_15] : memref<1x64x64xf32, #tpu.memory_space<vmem>>, vector<1x64x64xf32>
    %22 = vector.shape_cast %21 : vector<1x64x64xf32> to vector<64x64xf32>
    %cst_16 = arith.constant dense<0.000000e+00> : vector<16x64xf32>
    %23 = tpu.matmul %20, %22, %cst_16 {dimension_numbers = #tpu.dot_dimension_numbers<[1], [0], [0], [1], [0, 0, 1, 1], [], []>} : vector<16x64xf32>, vector<64x64xf32>, vector<16x64xf32> -> vector<16x64xf32>
    %c0_17 = arith.constant 0 : index
    %c0_18 = arith.constant 0 : index
    %c0_19 = arith.constant 0 : index
    %24 = vector.load %arg7[%c0_17, %c0_18, %c0_19] : memref<1x1x64xf32, #tpu.memory_space<vmem>>, vector<1x1x64xf32>
    %25 = vector.shape_cast %24 : vector<1x1x64xf32> to vector<1x64xf32>
    %26 = vector.broadcast %25 : vector<1x64xf32> to vector<16x64xf32>
    %27 = arith.addf %23, %26 : vector<16x64xf32>
    %cst_20 = arith.constant 0.000000e+00 : f32
    %28 = vector.broadcast %cst_20 : f32 to vector<16x64xf32>
    %29 = arith.maximumf %27, %28 : vector<16x64xf32>
    %c0_21 = arith.constant 0 : index
    %c0_22 = arith.constant 0 : index
    %30 = vector.load %arg14[%c0_21, %c0_22] : memref<16x64xf32, #tpu.memory_space<vmem>>, vector<16x64xf32>
    tpu.vector_store %arg14[%c0_21, %c0_22], %29 {strides = array<i32>} : memref<16x64xf32, #tpu.memory_space<vmem>>, vector<16x64xf32>,
    %c4_i32 = arith.constant 4 : i32
    %31 = arith.cmpi eq, %arg0, %c4_i32 : i32
    %32 = arith.extui %31 : i1 to i32
    %c0_i32_23 = arith.constant 0 : i32
    %33 = arith.cmpi ne, %32, %c0_i32_23 : i32
    scf.if %33 {
      %c0_24 = arith.constant 0 : index
      %c0_25 = arith.constant 0 : index
      %34 = vector.load %arg8[%c0_24, %c0_25] : memref<2x16xf32, #tpu.memory_space<vmem>>, vector<2x16xf32>
      %cst_26 = arith.constant dense<0.000000e+00> : vector<2x64xf32>
      %35 = tpu.matmul %34, %29, %cst_26 {dimension_numbers = #tpu.dot_dimension_numbers<[1], [0], [0], [1], [0, 0, 1, 1], [], []>} : vector<2x16xf32>, vector<16x64xf32>, vector<2x64xf32> -> vector<2x64xf32>
      %c0_27 = arith.constant 0 : index
      %c0_28 = arith.constant 0 : index
      %36 = vector.load %arg9[%c0_27, %c0_28] : memref<64x32xf32, #tpu.memory_space<vmem>>, vector<64x32xf32>
      %cst_29 = arith.constant dense<0.000000e+00> : vector<2x32xf32>
      %37 = tpu.matmul %35, %36, %cst_29 {dimension_numbers = #tpu.dot_dimension_numbers<[1], [0], [0], [1], [0, 0, 1, 1], [], []>} : vector<2x64xf32>, vector<64x32xf32>, vector<2x32xf32> -> vector<2x32xf32>
      %c0_30 = arith.constant 0 : index
      %c0_31 = arith.constant 0 : index
      %38 = vector.load %arg10[%c0_30, %c0_31] : memref<1x32xf32, #tpu.memory_space<vmem>>, vector<1x32xf32>
      %39 = vector.broadcast %38 : vector<1x32xf32> to vector<2x32xf32>
      %40 = arith.addf %37, %39 : vector<2x32xf32>
      %cst_32 = arith.constant 0.000000e+00 : f32
      %41 = vector.broadcast %cst_32 : f32 to vector<2x32xf32>
      %42 = arith.maximumf %40, %41 : vector<2x32xf32>
      %c0_33 = arith.constant 0 : index
      %c0_34 = arith.constant 0 : index
      %43 = vector.load %arg11[%c0_33, %c0_34] : memref<32x1xf32, #tpu.memory_space<vmem>>, vector<32x1xf32>
      %cst_35 = arith.constant dense<0.000000e+00> : vector<2x1xf32>
      %44 = tpu.matmul %42, %43, %cst_35 {dimension_numbers = #tpu.dot_dimension_numbers<[1], [0], [0], [1], [0, 0, 1, 1], [], []>} : vector<2x32xf32>, vector<32x1xf32>, vector<2x1xf32> -> vector<2x1xf32>
      %c0_36 = arith.constant 0 : index
      %c0_37 = arith.constant 0 : index
      %45 = vector.load %arg12[%c0_36, %c0_37] : memref<1x1xf32, #tpu.memory_space<vmem>>, vector<1x1xf32>
      %46 = vector.broadcast %45 : vector<1x1xf32> to vector<2x1xf32>
      %47 = arith.addf %44, %46 : vector<2x1xf32>
      %c0_38 = arith.constant 0 : index
      %c0_39 = arith.constant 0 : index
      %48 = vector.load %arg13[%c0_38, %c0_39] : memref<2x1xf32, #tpu.memory_space<vmem>>, vector<2x1xf32>
      tpu.vector_store %arg13[%c0_38, %c0_39], %47 {strides = array<i32>} : memref<2x1xf32, #tpu.memory_space<vmem>>, vector<2x1xf32>,
    } else {
    }
    return
  }
  func.func @transform_0(%arg0: i32) -> i32 {
    %c0_i32 = arith.constant 0 : i32
    %c0_i32_0 = arith.constant 0 : i32
    return %c0_i32 : i32
  }
  func.func @transform_1(%arg0: i32) -> (i32, i32) {
    %c0_i32 = arith.constant 0 : i32
    %c0_i32_0 = arith.constant 0 : i32
    %c0_i32_1 = arith.constant 0 : i32
    return %c0_i32, %c0_i32_0 : i32, i32
  }
  func.func @transform_2(%arg0: i32) -> (i32, i32) {
    %c0_i32 = arith.constant 0 : i32
    %c0_i32_0 = arith.constant 0 : i32
    %c0_i32_1 = arith.constant 0 : i32
    return %c0_i32, %c0_i32_0 : i32, i32
  }
  func.func @transform_3(%arg0: i32) -> (i32, i32, i32) {
    %c0_i32 = arith.constant 0 : i32
    %c0_i32_0 = arith.constant 0 : i32
    %c0_i32_1 = arith.constant 0 : i32
    return %arg0, %c0_i32, %c0_i32_0 : i32, i32, i32
  }
  func.func @transform_4(%arg0: i32) -> (i32, i32, i32) {
    %c0_i32 = arith.constant 0 : i32
    %c0_i32_0 = arith.constant 0 : i32
    %c0_i32_1 = arith.constant 0 : i32
    return %arg0, %c0_i32, %c0_i32_0 : i32, i32, i32
  }
  func.func @transform_5(%arg0: i32) -> (i32, i32, i32) {
    %c0_i32 = arith.constant 0 : i32
    %c0_i32_0 = arith.constant 0 : i32
    %c0_i32_1 = arith.constant 0 : i32
    return %arg0, %c0_i32, %c0_i32_0 : i32, i32, i32
  }
  func.func @transform_6(%arg0: i32) -> (i32, i32, i32) {
    %c0_i32 = arith.constant 0 : i32
    %c0_i32_0 = arith.constant 0 : i32
    %c0_i32_1 = arith.constant 0 : i32
    return %arg0, %c0_i32, %c0_i32_0 : i32, i32, i32
  }
  func.func @transform_7(%arg0: i32) -> (i32, i32) {
    %c0_i32 = arith.constant 0 : i32
    %c0_i32_0 = arith.constant 0 : i32
    %c0_i32_1 = arith.constant 0 : i32
    return %c0_i32, %c0_i32_0 : i32, i32
  }
  func.func @transform_8(%arg0: i32) -> (i32, i32) {
    %c0_i32 = arith.constant 0 : i32
    %c0_i32_0 = arith.constant 0 : i32
    %c0_i32_1 = arith.constant 0 : i32
    return %c0_i32, %c0_i32_0 : i32, i32
  }
  func.func @transform_9(%arg0: i32) -> (i32, i32) {
    %c0_i32 = arith.constant 0 : i32
    %c0_i32_0 = arith.constant 0 : i32
    %c0_i32_1 = arith.constant 0 : i32
    return %c0_i32, %c0_i32_0 : i32, i32
  }
  func.func @transform_10(%arg0: i32) -> (i32, i32) {
    %c0_i32 = arith.constant 0 : i32
    %c0_i32_0 = arith.constant 0 : i32
    %c0_i32_1 = arith.constant 0 : i32
    return %c0_i32, %c0_i32_0 : i32, i32
  }
  func.func @transform_11(%arg0: i32) -> (i32, i32) {
    %c0_i32 = arith.constant 0 : i32
    %c0_i32_0 = arith.constant 0 : i32
    %c0_i32_1 = arith.constant 0 : i32
    return %c0_i32, %c0_i32_0 : i32, i32
  }
  func.func @transform_12(%arg0: i32) -> (i32, i32) {
    %c0_i32 = arith.constant 0 : i32
    %c0_i32_0 = arith.constant 0 : i32
    %c0_i32_1 = arith.constant 0 : i32
    return %c0_i32, %c0_i32_0 : i32, i32
  }
}

</mosaic_0001>

<bundles_post_ra>
// kernel: tpu_custom_call.1
= control target key start
LH: loop header
LB: loop body
LE: loop exit
PB: predicated region body
PF: predicated region fallthrough
CT: control target
= control target key end

     0   :  { %s1923_s0 = inlined_call_operand.vmem [shape: f32[5], index: 0, kind: input, shape index: {}]   ;;  %s1924_s1 = inlined_call_operand.vmem [shape: f32[16,64], index: 1, kind: input, shape index: {}]   ;;  %s1925_s2 = inlined_call_operand.vmem [shape: f32[16,16], index: 2, kind: input, shape index: {}]   ;;  %s1926_s3 = inlined_call_operand.hbm [shape: f32[5,64,64], index: 3, kind: input, shape index: {}]   ;;  %s1927_s4 = inlined_call_operand.vmem [shape: f32[5,1,64], index: 4, kind: input, shape index: {}]   ;;  %s1928_s5 = inlined_call_operand.hbm [shape: f32[5,64,64], index: 5, kind: input, shape index: {}]   ;;  %s1929_s6 = inlined_call_operand.vmem [shape: f32[5,1,64], index: 6, kind: input, shape index: {}]   ;;  %s1930_s7 = inlined_call_operand.vmem [shape: f32[2,16], index: 7, kind: input, shape index: {}]   ;;  %s1931_s8 = inlined_call_operand.vmem [shape: f32[64,32], index: 8, kind: input, shape index: {}]   ;;  %s1932_s9 = inlined_call_operand.vmem [shape: f32[1,32], index: 9, kind: input, shape index: {}]   ;;  %s1933_s10 = inlined_call_operand.vmem [shape: f32[32,1], index: 10, kind: input, shape index: {}]   ;;  %s1934_s11 = inlined_call_operand.<no memory space> [shape: f32[1,1], index: 11, kind: input, shape index: {}]   ;;  %s1935_s12 = inlined_call_operand.vmem [shape: f32[2,1], index: 12, kind: output, shape index: {}]  }
   0x1   :  { %1942 = sst [smem:[#allocation16_spill]] %s1923_s0  ;;  %v17_v0 = vstv %s1934_s11 }
   0x2   :  { %1943 = sst [smem:[#allocation17_spill]] %s1926_s3  ;;  %18 = vst [vmem:[#allocation3] sm:$0x1] %v17_v0 }
   0x3   :  { %19 = vsyncpa [#allocation6], 0 }
   0x4   :  { %20 = vsyncpa [#allocation5], 0 }
   0x5   :  { %22 = vsyncpa [#allocation5 + $0x1], 0 }
   0x6   :  { %23 = vsyncpa [#allocation9], 0 }
   0x7   :  { %25 = vsyncpa [#allocation9 + $0x1], 0  ;;  %s1618_s23 = smov 0   ;;  %s1620_s24 = smov 0  }
   0x8   :  { %s1622_s25 = smov 0   ;;  %s1624_s26 = smov 0  }
   0x9 LB: > { %1944 = sst [smem:[#allocation13_spill]] %s1536_s25  ;;  %s1637_s11 = sadd.s32 4294967295, %s1540_s26   ;;  %s1540_s26 = sphi %s1624_s26, %s1959_s26   ;;  %s1536_s25 = sphi %s1622_s25, %s1961_s25   ;;  %s1532_s24 = sphi %s1620_s24, %s1963_s24   ;;  %s1528_s23 = sphi %s1618_s23, %s1962_s23  }
   0xa   : > { %s1640_s27 = sadd.s32 1, %s1540_s26   ;;  %s101_s29 = sadd.s32 1, %s1536_s25 }
   0xb   : > { %1945 = sst [smem:[#allocation14_spill]] %s1640_s27  ;;  %s98_s28 = ssub.s32 %s1540_s26, %s1640_s27 }
   0xc   : > { %p99_p0 = scmp.eq.s32.totalorder %s98_s28, 0  ;;  %p108_p1 = scmp.ne.s32.totalorder %s1536_s25, %s1532_s24 }
   0xd   : > { %p109_p2 = scmp.eq.s32.totalorder %s1540_s26, 0  ;;  %p114_p3 = scmp.ne.s32.totalorder %s1532_s24, %s1528_s23 }
   0xe   : > { %s1650_s30 = scalar_select %p99_p0, %s1536_s25, %s101_s29  }
   0xf   : > { %p1652_p4 = por %p109_p2, %p108_p1  ;;  %p1938_p5 = scmp.eq.s32.totalorder %s1637_s11, 0 }
  0x10   : > { %1946 = sst [smem:[#allocation15_spill]] %s1650_s30  ;;  %p1151_p6 = scmp.ge.s32.totalorder %s1540_s26, 1 }
  0x11   : > { %p329_p7 = scmp.lt.s32.totalorder %s1540_s26, 6  ;;  %p1661_p8 = por %p1938_p5, %p114_p3 }
  0x12   : > { %s1950_s0 = sld [smem:[#allocation16_spill]]  ;;  %p1383_p12 = scmp.lt.s32.totalorder %s1540_s26, 5 }
  0x13   : > { %s1948_s14 = scalar_select %p1661_p8, 1, 0 }
  0x14   : > { %p1666_p10 = pnand %p1151_p6, %p329_p7  ;;  %s1677_s19 = sand.u32 1, %s1536_s25  }
  0x15   : > { %p1687_p0 = pnand %p1383_p12, %p1652_p4  ;;  %s1154_s22 = sshll.u32 %s1677_s19, 6 }
  0x16   : > { %p1371_p11 = pneg %p1666_p10 }
  0x18   : > { %s342_s18 = sshll.u32 %s1950_s0, 4  ;;  %p1681_p13 = pnand %p1371_p11, %p1938_p5  ;;  %s343_s18 = int_to_ptr.vmem [resolvable:$true] %s342_s18 }
  0x19   : > { %s1423_s23 = scalar_lea.vmem %s343_s18, 16  ;;  %p1431_p7 = scmp.lt.s32.totalorder %s343_s18, %s343_s18 }
  0x1a   : > { %p1424_p1 = scmp.ne.s32.totalorder %s343_s18, %s1423_s23  ;;  %p1425_p2 = pneg %p1681_p13 }
  0x1b   : > { %p1432_p9 = scmp.lt.s32.totalorder %s1423_s23, %s1423_s23 }
  0x1c   : > { %p1426_p3 = pnand %p1425_p2, %p1424_p1 }
  0x1d   : > { %p1433_p8 = por %p1432_p9, %p1431_p7 }
  0x1e   : > { %p1427_p6 = pneg %p1426_p3 }
  0x20   : > { %p1434_p11 = pnand %p1433_p8, %p1427_p6 }
  0x22   : > { %1437 = shalt.err (!%p1434_p11)
}
  0x23   : > { %s1542_s28 = smov [#allocation4]   ;;  %s1937_s29 = sshll.u32 %s1540_s26, 10 }
  0x24   : > { %1374 = dma.vmem_to_smem (!%p1681_p13), %s343_s18, 16, %s1542_s28, [#allocation6]  }
  0x25   : > { %s1953_s3 = sld [smem:[#allocation17_spill]]  ;;  %s378_s20 = scalar_lea.vmem [#allocation7], %s1154_s22 }
  0x26   : > { %s385_s23 = sshll.u32 %s378_s20, 4  ;;  %s375_s0 = scalar_lea.sflag [#allocation5], %s1677_s19  ;;  %s1706_s23 = int_to_ptr.vmem [resolvable:$true] %s385_s23 }
  0x27   : > { %p1440_p8 = pneg %p1687_p0 }
  0x2b   : > { %s1702_s17 = scalar_lea.hbm %s1953_s3, %s1937_s29  ;;  %s1443_s13 = scalar_lea.hbm %s1953_s3, 5120 }
  0x2c   : > { %s1438_s30 = scalar_lea.hbm %s1702_s17, 1024  ;;  %p1444_p13 = scmp.lt.u32.totalorder %s1702_s17, %s1953_s3 }
  0x2d   : > { %p1439_p4 = scmp.ne.s32.totalorder %s1702_s17, %s1438_s30  ;;  %p1445_p1 = scmp.lt.u32.totalorder %s1443_s13, %s1438_s30 }
  0x2e   : > { %p1447_p3 = scmp.lt.u32.totalorder %s1438_s30, %s1702_s17 }
  0x2f   : > { %p1441_p9 = pnand %p1440_p8, %p1439_p4  ;;  %p1446_p2 = por %p1445_p1, %p1444_p13 }
  0x31   : > { %p1442_p12 = pneg %p1441_p9  ;;  %p1448_p6 = por %p1447_p3, %p1446_p2 }
  0x33   : > { %p1449_p7 = pnand %p1448_p6, %p1442_p12 }
  0x35   : > { %1452 = shalt.err (!%p1449_p7)
}
  0x36   : > { %s1453_s20 = scalar_lea.vmem %s1706_s23, 1024  ;;  %s1543_s18 = smov [#allocation7]  }
  0x37   : > { %p1454_p11 = scmp.ne.s32.totalorder %s1706_s23, %s1453_s20  ;;  %s1458_s28 = sshll.u32 %s1543_s18, 4  ;;  %s1459_s28 = int_to_ptr.vmem [resolvable:$false] %s1458_s28 }
  0x38   : > { %s1460_s29 = scalar_lea.vmem %s1459_s28, 2048  ;;  %p1461_p5 = scmp.lt.s32.totalorder %s1706_s23, %s1459_s28 }
  0x39   : > { %p1456_p4 = pnand %p1454_p11, %p1440_p8  ;;  %p1462_p13 = scmp.lt.s32.totalorder %s1460_s29, %s1453_s20 }
  0x3b   : > { %p1457_p9 = pneg %p1456_p4  ;;  %p1463_p1 = por %p1462_p13, %p1461_p5 }
  0x3d   : > { %p1464_p2 = pnand %p1463_p1, %p1457_p9 }
  0x3f   : > { %1467 = shalt.err (!%p1464_p2)
}
  0x40   : > { %s1544_s30 = smov 128   ;;  %s1545_s13 = smov 8  }
  0x41   : > { %1378 = dma.hbm_to_vmem [thread:$0]  (!%p1687_p0), %s1702_s17, 1024, %s1706_s23, %s375_s0, %s1544_s30, %s1544_s30, %s1545_s13  }
  0x42   : > { %s1954_s16 = sshll.u32 %s1540_s26, 10  ;;  %s405_s29 = scalar_lea.vmem [#allocation8], %s1154_s22 }
  0x43   : > { %s1744_s28 = scalar_lea.hbm %s1928_s5, %s1954_s16  ;;  %s412_s3 = sshll.u32 %s405_s29, 4  ;;  %s1748_s3 = int_to_ptr.vmem [resolvable:$true] %s412_s3 }
  0x44   : > { %s402_s25 = scalar_lea.sflag [#allocation9], %s1677_s19  ;;  %s1468_s27 = scalar_lea.hbm %s1744_s28, 1024 }
  0x45   : > { %p1469_p5 = scmp.ne.s32.totalorder %s1744_s28, %s1468_s27  ;;  %s1473_s17 = scalar_lea.hbm %s1928_s5, 5120 }
  0x46   : > { %p1474_p6 = scmp.lt.u32.totalorder %s1744_s28, %s1928_s5  ;;  %p1475_p7 = scmp.lt.u32.totalorder %s1473_s17, %s1468_s27 }
  0x47   : > { %p1471_p12 = pnand %p1469_p5, %p1440_p8  ;;  %p1477_p4 = scmp.lt.u32.totalorder %s1468_s27, %s1744_s28 }
  0x48   : > { %p1476_p11 = por %p1475_p7, %p1474_p6 }
  0x49   : > { %p1472_p3 = pneg %p1471_p12 }
  0x4a   : > { %p1478_p9 = por %p1477_p4, %p1476_p11 }
  0x4c   : > { %p1479_p13 = pnand %p1478_p9, %p1472_p3 }
  0x4e   : > { %1482 = shalt.err (!%p1479_p13)
}
  0x4f   : > { %s1483_s22 = scalar_lea.vmem %s1748_s3, 1024  ;;  %s1546_s20 = smov [#allocation8]  }
  0x50   : > { %p1484_p1 = scmp.ne.s32.totalorder %s1748_s3, %s1483_s22  ;;  %s1488_s18 = sshll.u32 %s1546_s20, 4  ;;  %s1489_s18 = int_to_ptr.vmem [resolvable:$false] %s1488_s18 }
  0x51   : > { %s1490_s29 = scalar_lea.vmem %s1489_s18, 2048  ;;  %p1491_p12 = scmp.lt.s32.totalorder %s1748_s3, %s1489_s18 }
  0x52   : > { %p1486_p2 = pnand %p1484_p1, %p1440_p8  ;;  %p1492_p6 = scmp.lt.s32.totalorder %s1490_s29, %s1483_s22 }
  0x54   : > { %p1487_p5 = pneg %p1486_p2  ;;  %p1493_p7 = por %p1492_p6, %p1491_p12 }
  0x56   : > { %p1494_p11 = pnand %p1493_p7, %p1487_p5 }
  0x58   : > { %1497 = shalt.err (!%p1494_p11)
}
  0x59   : > { %1381 = dma.hbm_to_vmem [thread:$0]  (!%p1687_p0), %s1744_s28, 1024, %s1748_s3, %s402_s25, %s1544_s30, %s1544_s30, %s1545_s13  }
  0x5a   : > { %430 = sbr.rel (%p1666_p10) target bundleno = 1422 (0x58e), region = 68  ;;  %p1955_p8 = scmp.eq.s32.totalorder (!%p1666_p10), %s1637_s11, 0 }
  0x61   : > { %1515 = dma.done.wait (%p1955_p8), [#allocation6], 16   ;;  %p1956_p3 = pmov %p1955_p8 }
  0x62   : > { %s436_s27 = sand.u32 1, %s1532_s24   ;;  %p1957_p4 = scmp.ne.s32.totalorder %s1948_s14, 0 }
  0x63   : > { %1517 = vsyncadd (%p1956_p3), [#allocation6], 4294967280  ;;  %s1162_s21 = sshll.u32 %s436_s27, 6  ;;  %s437_s0 = scalar_lea.sflag [#allocation5], %s436_s27 }
  0x64   : > { %s1786_s26 = scalar_lea.vmem [#allocation7], %s1162_s21 }
  0x65   : > { %1519 = dma.done.wait (%p1957_p4), %s437_s0, 1024  }
  0x66   : > { %1521 = vsyncadd (%p1957_p4), %s437_s0, 4294966272  ;;  %s446_s3 = scalar_lea.sflag [#allocation9], %s436_s27  ;;  %s1792_s25 = scalar_lea.vmem [#allocation8], %s1162_s21 }
  0x67   : > { %1523 = dma.done.wait (%p1957_p4), %s446_s3, 1024  }
  0x68   : > { %1525 = vsyncadd (%p1957_p4), %s446_s3, 4294966272 }
  0x69   : > { %454 = sfence }
  0x6a   : > { %p497_p10 = scmp.lt.s32.totalorder %s1637_s11, 4  ;;  %p1958_p0 = scmp.ne.s32.totalorder %s1637_s11, 0 }
  0x6b   : > { %v507_v1 = vld [vmem:[%s1924_s1] sm:$0xff] (!%p1958_p0)  ;;  %vm509_vm0 = vcmask (!%p1958_p0), 523264   ;;  %v508_v2 = vld [vmem:[%s1924_s1 + $0x8] sm:$0xff] (!%p1958_p0) }
  0x6c   : > { %s1800_s15 = scalar_select %p497_p10, %s1637_s11, 4 }
  0x6d   : > { %506 = sbr.rel (%p1958_p0) target bundleno = 116 (0x74), region = 84  ;;  %510 = vst.msk [vmem:[#allocation2] sm:$0xff] (!%p1958_p0), %vm509_vm0, %v507_v1  ;;  %511 = vst.msk [vmem:[#allocation2 + $0x8] sm:$0xff] (!%p1958_p0), %vm509_vm0, %v508_v2 }
  0x6e   : > { %s499_s13 = scalar_lea.vmem %s1927_s4, %s1800_s15  ;;  %s502_s23 = scalar_lea.vmem %s1929_s6, %s1800_s15 }
  0x74 PF: > { %v512_v3 = vld [vmem:[#allocation2] sm:$0xff]  ;;  %v513_v4 = vld [vmem:[#allocation2 + $0x8] sm:$0xff]  ;;  %vm521_vm1 = vcmask 130048   ;;  %v605_v7 = vld [vmem:[%s1786_s26] sm:$0xff]  ;;  %s514_s0 = sld [smem:[#allocation4 + %s1637_s11]]  ;;  %vm620_vm2 = vcmask 523264  }
  0x75   : > { %v519_v5 = vld [vmem:[%s1925_s2] sm:$0xff]  ;;  %v1306_v6 = vpack.c.bf16 %v513_v4, %v512_v3  ;;  %v608_v11 = vld [vmem:[%s1786_s26 + $0x18] sm:$0xff]  ;;  %v609_v13 = vld [vmem:[%s1786_s26 + $0x20] sm:$0xff]  ;;  %p1173_p9 = scmp.ne.s32.totalorder %s1637_s11, 4 }
  0x76   : > { %1228 = vmatprep.mubr.msk.f32.mxu0 %vm521_vm1, %v519_v5  ;;  %v606_v8 = vld [vmem:[%s1786_s26 + $0x8] sm:$0xff]  ;;  %v607_v10 = vld [vmem:[%s1786_s26 + $0x10] sm:$0xff]  ;;  %v612_v18 = vld [vmem:[%s1786_s26 + $0x38] sm:$0xff]  ;;  %v1547_v55 = vmov (!%p1173_p9), 0.0|0.0   ;;  %vm1548_vm3 = vmmov (!%p1173_p9), 0   ;;  %v1549_v56 = vmov (!%p1173_p9), 0.0  }
  0x77   : > { %v1310_v9 = vpack.c.bf16 %v606_v8, %v605_v7  ;;  %1307 = vmatprep.subr.bf16.mxu0 %v1306_v6  ;;  %v1314_v12 = vpack.c.bf16 %v608_v11, %v607_v10  ;;  %v610_v14 = vld [vmem:[%s1786_s26 + $0x28] sm:$0xff]  ;;  %v520_v15 = vld [vmem:[%s1925_s2 + $0x8] sm:$0xff]  ;;  %v704_v20 = vld [vmem:[%s1792_s25] sm:$0xff]  ;;  %vm982_vm4 = vcmask (!%p1173_p9), 261120   ;;  %vm1056_vm5 = vcmask (!%p1173_p9), 1024  }
  0x78   : > { %1309 = vmatpush3.bf16.msra.mxu0 %v1306_v6  ;;  %v1318_v16 = vpack.c.bf16 %v610_v14, %v609_v13  ;;  %v611_v17 = vld [vmem:[%s1786_s26 + $0x30] sm:$0xff]  ;;  %v705_v21 = vld [vmem:[%s1792_s25 + $0x8] sm:$0xff]  ;;  %v707_v24 = vld [vmem:[%s1792_s25 + $0x18] sm:$0xff] }
  0x79   : > { %1311 = vmatprep.subr.bf16.mxu1 %v1310_v9  ;;  %v1322_v19 = vpack.c.bf16 %v612_v18, %v611_v17  ;;  %v706_v22 = vld [vmem:[%s1792_s25 + $0x10] sm:$0xff]  ;;  %v1326_v23 = vpack.c.bf16 %v705_v21, %v704_v20  ;;  %v708_v26 = vld [vmem:[%s1792_s25 + $0x20] sm:$0xff]  ;;  %v709_v27 = vld [vmem:[%s1792_s25 + $0x28] sm:$0xff] }
  0x7a   : > { %1313 = vmatpush3.bf16.msra.mxu1 %v1310_v9  ;;  %v1330_v25 = vpack.c.bf16 %v707_v24, %v706_v22  ;;  %v1334_v28 = vpack.c.bf16 %v709_v27, %v708_v26  ;;  %s515_s26 = sadd.f32 1.0, %s514_s0  ;;  %v710_v36 = vld [vmem:[%s1792_s25 + $0x30] sm:$0xff]  ;;  %v711_v37 = vld [vmem:[%s1792_s25 + $0x38] sm:$0xff]  ;;  %v1167_v39 = vld [vmem:[%s499_s13] ss:$0 sm:$0xff] }
  0x7b   : > { %1315 = vmatprep.subr.bf16.mxu1 %v1314_v12  ;;  %1229 = vmatmul.mubr.msk.f32.vlgmr.msra.gmra.mrb[0].mxu0 %vm521_vm1, %v520_v15  ;;  %v1338_v38 = vpack.c.bf16 %v711_v37, %v710_v36  ;;  %v1170_v46 = vld [vmem:[%s502_s23] ss:$0 sm:$0xff]  ;;  %v883_v57 = vld [vmem:[%s1931_s8 + $0x8] sm:$0xff] (!%p1173_p9)  ;;  %v884_v58 = vld [vmem:[%s1931_s8 + $0x10] sm:$0xff] (!%p1173_p9) }
  0x7c   : > { %1327 = vmatprep.subr.bf16.mxu0 %v1326_v23  ;;  %v516_v29 = vstv %s515_s26  ;;  %v882_v54 = vld [vmem:[%s1931_s8] sm:$0xff] (!%p1173_p9)  ;;  %v885_v59 = vld [vmem:[%s1931_s8 + $0x18] sm:$0xff] (!%p1173_p9)  ;;  %v887_v0 = vld [vmem:[%s1931_s8 + $0x28] sm:$0xff] (!%p1173_p9) }
  0x7d   : > { %1329 = vmatpush3.bf16.msra.mxu0 %v1326_v23  ;;  %v517_v30 = vmul.f32 %v516_v29, %v512_v3  ;;  %v518_v31 = vmul.f32 %v516_v29, %v513_v4  ;;  %v808_v60 = vld [vmem:[%s1930_s7] sm:$0x3] (!%p1173_p9)  ;;  %v1346_v61 = vpack.c.bf16 (!%p1173_p9), %v883_v57, %v882_v54  ;;  %v1349_v62 = vpack.c.bf16 (!%p1173_p9), %v885_v59, %v884_v58  ;;  %v888_v2 = vld [vmem:[%s1931_s8 + $0x30] sm:$0xff] (!%p1173_p9)  ;;  %v889_v3 = vld [vmem:[%s1931_s8 + $0x38] sm:$0xff] (!%p1173_p9) }
  0x7e   : > { %1317 = vmatpush3.bf16.msra.mxu1 %v1314_v12  ;;  %1331 = vmatprep.subr.bf16.mxu0 %v1330_v25  ;;  %v886_v63 = vld [vmem:[%s1931_s8 + $0x20] sm:$0xff] (!%p1173_p9)  ;;  %v1355_v4 = vpack.c.bf16 (!%p1173_p9), %v889_v3, %v888_v2  ;;  %v972_v6 = vld [vmem:[%s1933_s10 + $0x8] sm:$0xff] (!%p1173_p9)  ;;  %v973_v10 = vld [vmem:[%s1933_s10 + $0x10] sm:$0xff] (!%p1173_p9) }
  0x7f   : > { %1319 = vmatprep.subr.bf16.mxu1 %v1318_v16  ;;  %v1352_v1 = vpack.c.bf16 (!%p1173_p9), %v887_v0, %v886_v63  ;;  %v971_v5 = vld [vmem:[%s1933_s10] sm:$0xff] (!%p1173_p9)  ;;  %v974_v11 = vld [vmem:[%s1933_s10 + $0x18] sm:$0xff] (!%p1173_p9)  ;;  %v1177_v18 = vld [vmem:[#allocation3] ss:$0 sm:$0xff] (!%p1173_p9) }
  0x80   : > { %v1358_v7 = vpack.c.bf16 (!%p1173_p9), %v972_v6, %v971_v5  ;;  %v1361_v12 = vpack.c.bf16 (!%p1173_p9), %v974_v11, %v973_v10  ;;  %v1175_v13 = vld [vmem:[%s1932_s9] ss:$0 sm:$0xff] (!%p1173_p9) }
  0x81   : > { %1333 = vmatpush3.bf16.msra.mxu0 %v1330_v25 }
  0x82   : > { %1321 = vmatpush3.bf16.msra.mxu1 %v1318_v16  ;;  %1335 = vmatprep.subr.bf16.mxu0 %v1334_v28 }
  0x83   : > { %1323 = vmatprep.subr.bf16.mxu1 %v1322_v19 }
  0x85   : > { %1337 = vmatpush3.bf16.msra.mxu0 %v1334_v28 }
  0x86   : > { %1325 = vmatpush3.bf16.msra.mxu1 %v1322_v19  ;;  %1339 = vmatprep.subr.bf16.mxu0 %v1338_v38 }
  0x87   : > { %1345 = vmatprep.subr.bf16.mxu1 (!%p1173_p9), %v1547_v55 }
  0x89   : > { %1341 = vmatpush3.bf16.msra.mxu0 %v1338_v38 }
  0x8a   : > { %1342 = vmatprep.subr.bf16.mxu0 (!%p1173_p9), %v1547_v55 }
 0x14e   : > { %v1230_v32 = vpop.f32.mrb[0].mxu0 }
 0x14f   : > { %v594_v33 = vpop.f32.mrb[1].mxu0  ;;  %v604_v35 = vadd.f32 %v1230_v32, %v518_v31 }
 0x150   : > { %v603_v34 = vadd.f32 %v594_v33, %v517_v30 }
 0x152   : > { %1247 = vmatprep.mubr.msk.f32.mxu1 %vm620_vm2, %v603_v34 }
 0x153   : > { %1248 = vmatmul.mubr.msk.f32.vlgmr.msra.gmra.mrb[0].mxu1 %vm620_vm2, %v604_v35 }
 0x154   : > { %1292 = vmatprep.mubr.msk.f32.mxu1 (!%p1173_p9), %vm1548_vm3, %v1549_v56  ;;  %1347 = vmatpush3.bf16.msra.mxu1 (!%p1173_p9), %v1346_v61 }
 0x155   : > { %1348 = vmatprep.subr.bf16.mxu1 (!%p1173_p9), %v1547_v55 }
 0x158   : > { %1350 = vmatpush3.bf16.msra.mxu1 (!%p1173_p9), %v1349_v62 }
 0x159   : > { %1351 = vmatprep.subr.bf16.mxu1 (!%p1173_p9), %v1547_v55 }
 0x15c   : > { %1353 = vmatpush3.bf16.msra.mxu1 (!%p1173_p9), %v1352_v1 }
 0x15d   : > { %1354 = vmatprep.subr.bf16.mxu1 (!%p1173_p9), %v1547_v55 }
 0x160   : > { %1356 = vmatpush3.bf16.msra.mxu1 (!%p1173_p9), %v1355_v4 }
 0x226   : > { %v1249_v40 = vpop.f32.mrb[0].mxu1 }
 0x227   : > { %v699_v41 = vadd.f32 %v1249_v40, %v1167_v39  ;;  %v693_v42 = vpop.f32.mrb[1].mxu1 }
 0x228   : > { %v694_v43 = vadd.f32 %v1167_v39, %v693_v42 }
 0x229   : > { %v703_v45 = vmax.f32 %v699_v41, 0.0 }
 0x22a   : > { %v702_v44 = vmax.f32 %v694_v43, 0.0 }
 0x22c   : > { %1266 = vmatprep.mubr.msk.f32.mxu0 %vm620_vm2, %v702_v44 }
 0x22d   : > { %1267 = vmatmul.mubr.msk.f32.vlgmr.msra.gmra.mrb[2].mxu0 %vm620_vm2, %v703_v45 }
 0x22e   : > { %1273 = vmatprep.mubr.msk.f32.mxu0 (!%p1173_p9), %vm1548_vm3, %v1549_v56 }
 0x300   : > { %v1268_v47 = vpop.f32.mrb[2].mxu0  ;;  %807 = sbr.rel (%p1173_p9) target bundleno = 1422 (0x58e), region = 88 }
 0x301   : > { %v797_v48 = vadd.f32 %v1268_v47, %v1170_v46  ;;  %v791_v49 = vpop.f32.mrb[3].mxu0 }
 0x302   : > { %v792_v50 = vadd.f32 %v1170_v46, %v791_v49 }
 0x303   : > { %v801_v51 = vmax.f32 %v797_v48, 0.0 }
 0x304   : > { %v800_v52 = vmax.f32 %v792_v50, 0.0 }
 0x305   : > { %803 = vst.msk [vmem:[#allocation2 + $0x8] sm:$0xff] %vm620_vm2, %v801_v51 }
 0x306   : > { %802 = vst.msk [vmem:[#allocation2] sm:$0xff] %vm620_vm2, %v800_v52  ;;  %v1343_v53 = vpack.c.bf16 (!%p1173_p9), %v801_v51, %v800_v52 }
 0x308   : > { %1344 = vmatpush3.bf16.msra.mxu0 %v1343_v53 }
 0x309   : > { %1357 = vmatprep.subr.bf16.mxu0 %v1547_v55 }
 0x30b   : > { %1274 = vmatmul.mubr.msk.f32.vlgmr.msra.gmra.mrb[0].mxu0 %vm521_vm1, %v808_v60 }
 0x30c   : > { %1303 = vmatprep.mubr.msk.f32.mxu0 %vm1548_vm3, %v1549_v56  ;;  %1359 = vmatpush3.bf16.msra.mxu0 %v1358_v7 }
 0x30d   : > { %1360 = vmatprep.subr.bf16.mxu0 %v1547_v55 }
 0x310   : > { %1362 = vmatpush3.bf16.msra.mxu0 %v1361_v12 }
 0x3de   : > { %v878_v8 = vpop.f32.mrb[0].mxu0 }
 0x3df   : > { %v1275_v9 = vpop.f32.mrb[1].mxu0  ;;  %1293 = vmatmul.mubr.msk.f32.vlgmr.msra.gmra.mrb[0].mxu1 %vm620_vm2, %v878_v8 }
 0x4b2   : > { %v966_v14 = vpop.f32.mrb[0].mxu1 }
 0x4b3   : > { %v967_v15 = vadd.f32 %v1175_v13, %v966_v14  ;;  %v1294_v16 = vpop.f32.mrb[1].mxu1 }
 0x4b5   : > { %v970_v17 = vmax.f32 %v967_v15, 0.0 }
 0x4b7   : > { %1304 = vmatmul.mubr.msk.f32.vlgmr.msra.gmra.mrb[2].mxu0 %vm982_vm4, %v970_v17 }
 0x58a   : > { %v1052_v19 = vpop.f32.mrb[2].mxu0 }
 0x58b   : > { %v1053_v20 = vadd.f32 %v1177_v18, %v1052_v19  ;;  %v1305_v21 = vpop.f32.mrb[3].mxu0 }
 0x58d   : > { %1057 = vst.msk [vmem:[%s1935_s12] sm:$0x3] %vm1056_vm5, %v1053_v20 }
 0x58e PF: > { %s1959_s26 = sld [smem:[#allocation14_spill]]  ;;  %s1960_s18 = sld [smem:[#allocation13_spill]] }
 0x58f   : > { %s1961_s25 = sld [smem:[#allocation15_spill]]  ;;  %s1962_s23 = smov %s1532_s24 }
 0x594   : > { %p28_p13 = scmp.ge.s32.totalorder %s1959_s26, 7   ;;  %s1963_s24 = smov %s1960_s18 }
 0x596   :  { %30 = sbr.rel (!%p28_p13) target bundleno = 9 (0x9), region = 136 }
 0x59d   :  { %1069 = vsyncpa [#allocation5], 1 }
 0x59e   :  { %1071 = vsyncpa [#allocation5 + $0x1], 1 }
 0x59f   :  { %1072 = vsyncpa [#allocation9], 1 }
 0x5a0   :  { %1074 = vsyncpa [#allocation9 + $0x1], 1 }
 0x5a1   :  { %1075 = vsyncpa [#allocation6], 1 }
 0x5a2   :  { %1077 = vsyncpa [#allocation6 + $0x1], 1 }

</bundles_post_ra>
